<compile_context>
chip_gen: v6e
topology: v6e:2x2x1
jax: 0.10.0
libtpu: 0.0.40
codegen_flags: <defaults>
</compile_context>

<pallas_src>
import jax
import jax.numpy as jnp
from jax.experimental import pallas as pl
from jax.experimental.pallas import tpu as pltpu


def gradient_regularization(outputs, grad, y, alpha=0.1, x=None, model=None):
    """Returns (total_loss, xloss) matching the PyTorch forward.

    `x` and `model` are accepted for signature fidelity but do not enter the math.
    """
    alpha = float(alpha)
    n, c = outputs.shape
    n = int(n)
    c = int(c)
    y2d = y.reshape(n, 1).astype(jnp.int32)

    # ---- lane-dense grad view (zero-copy when size % 128 == 0) -----------------
    gflat = grad.reshape(-1)
    true_size = int(gflat.shape[0])
    main = (true_size // 128) * 128
    if main == 0:
        # Degenerate: grad smaller than one lane row; everything handled as "tail".
        g2d = jnp.zeros((8, 128), dtype=grad.dtype)
    elif main == true_size:
        g2d = gflat.reshape(-1, 128)                  # free: pure metadata reshape
    else:
        # TODO(synk): the prefix slice may still materialize one copy of the main
        # part in HBM on this (rare) ragged path; all common NCHW grad sizes take
        # the zero-copy branch above.
        g2d = gflat[:main].reshape(-1, 128)
    rows = int(g2d.shape[0])

    # ---- tiling -----------------------------------------------------------------
    # TR = 8192 rows -> 4 MiB/buffer f32 (2 MiB bf16); double-buffered ~8 MiB.
    # TODO(synk): on v7x consider TR=16384 (+vmem_limit bump) and a 2-TensorCore
    # split of the grad rows with per-core partial accumulators.
    tr = min(rows, 8192)
    grad_tiles = (rows + tr - 1) // tr
    mask_grad = (rows % tr) != 0            # only the last grad tile can be ragged

    # Make batch_tiles == 1 for typical N so the NLL side runs entirely in step 0.
    tn = n if n * c * outputs.dtype.itemsize <= (4 << 20) else 1024
    batch_tiles = (n + tn - 1) // tn
    mask_nll = (n % tn) != 0

    grid_len = max(grad_tiles, batch_tiles)

    def kernel(logits_ref, y_ref, g_ref, total_ref, xloss_ref, abs_acc, nll_acc):
        pid = pl.program_id(0)

        @pl.when(pid == 0)
        def _init():
            abs_acc[...] = jnp.zeros_like(abs_acc)
            nll_acc[...] = jnp.zeros_like(nll_acc)

        # -------- |grad| partial sums: pure VPU adds into (8,128) accumulator ----
        def grad_accum(masked):
            gabs = jnp.abs(g_ref[...].astype(jnp.float32))           # (tr, 128)
            if masked:
                rows_left = rows - pid * tr
                rmask = jax.lax.broadcasted_iota(jnp.int32, (tr, 1), 0) < rows_left
                gabs = jnp.where(rmask, gabs, 0.0)
            if tr % 8 == 0:
                # Layout-preserving sublane-dim split; axis-0 sum = plain vreg adds.
                abs_acc[...] += gabs.reshape(tr // 8, 8, 128).sum(axis=0)
            else:
                abs_acc[0:1, :] += jnp.sum(gabs, axis=0, keepdims=True)

        if mask_grad:
            @pl.when(pid < grad_tiles - 1)
            def _grad_fast():
                grad_accum(False)

            @pl.when(pid == grad_tiles - 1)
            def _grad_last():
                grad_accum(True)
        else:
            @pl.when(pid < grad_tiles)
            def _grad_all():
                grad_accum(False)

        # -------- NLL partial sums: logsumexp(logits) - logits[y] ---------------
        def nll_accum(masked):
            logits = logits_ref[...].astype(jnp.float32)              # (tn, C)
            m = jnp.max(logits, axis=1, keepdims=True)
            lse = jnp.log(jnp.sum(jnp.exp(logits - m), axis=1, keepdims=True)) + m
            cls = jax.lax.broadcasted_iota(jnp.int32, (tn, c), 1)
            picked = jnp.sum(jnp.where(cls == y_ref[...], logits, 0.0),
                             axis=1, keepdims=True)                   # (tn, 1)
            nll = lse - picked
            if masked:
                n_left = n - pid * tn
                bmask = jax.lax.broadcasted_iota(jnp.int32, (tn, 1), 0) < n_left
                nll = jnp.where(bmask, nll, 0.0)
            nll_acc[...] += jnp.sum(nll, axis=0, keepdims=True)       # (1, 1)

        if mask_nll:
            @pl.when(pid < batch_tiles - 1)
            def _nll_fast():
                nll_accum(False)

            @pl.when(pid == batch_tiles - 1)
            def _nll_last():
                nll_accum(True)
        else:
            @pl.when(pid < batch_tiles)
            def _nll_all():
                nll_accum(False)

        # -------- finalize: the only cross-lane/sublane reductions ---------------
        @pl.when(pid == pl.num_programs(0) - 1)
        def _fini():
            sub = jnp.sum(abs_acc[...], axis=0, keepdims=True)        # (1, 128)
            abs_total = jnp.sum(sub, axis=1, keepdims=True)           # (1, 1)
            xloss = abs_total * (1.0 / true_size)
            total = nll_acc[...] * (1.0 / n) + alpha * xloss
            xloss_ref[...] = xloss
            total_ref[...] = total

    cost = pl.CostEstimate(
        flops=2 * rows * 128 + 8 * n * c,
        transcendentals=n * c,
        bytes_accessed=(rows * 128 * g2d.dtype.itemsize
                        + n * c * outputs.dtype.itemsize
                        + n * 4 + 8),
    )

    total, xloss = pl.pallas_call(
        kernel,
        out_shape=(jax.ShapeDtypeStruct((1, 1), jnp.float32),
                   jax.ShapeDtypeStruct((1, 1), jnp.float32)),
        grid=(grid_len,),
        in_specs=[
            # Clamped index maps: once a stream is exhausted its block index stops
            # changing, so Pallas skips the re-DMA and pl.when skips the compute.
            pl.BlockSpec((tn, c), lambda i: (jnp.minimum(i, batch_tiles - 1), 0)),
            pl.BlockSpec((tn, 1), lambda i: (jnp.minimum(i, batch_tiles - 1), 0)),
            pl.BlockSpec((tr, 128), lambda i: (jnp.minimum(i, grad_tiles - 1), 0)),
        ],
        out_specs=(pl.BlockSpec((1, 1), lambda i: (0, 0)),
                   pl.BlockSpec((1, 1), lambda i: (0, 0))),
        scratch_shapes=[pltpu.VMEM((8, 128), jnp.float32),   # |grad| vector accumulator
                        pltpu.VMEM((1, 1), jnp.float32)],    # NLL sum (batch_tiles≈1)
        compiler_params=pltpu.CompilerParams(
            dimension_semantics=("arbitrary",),
            vmem_limit_bytes=32 * 1024 * 1024),
        cost_estimate=cost,
    )(outputs, y2d, g2d)

    total = total[0, 0]
    xloss = xloss[0, 0]

    # Ragged tail (<128 elements): tiny wrapper-side abs-sum folded in (no pad copy).
    if main != true_size:
        tail = jnp.sum(jnp.abs(gflat[main:]).astype(jnp.float32)) / true_size
        xloss = xloss + tail
        total = total + alpha * tail

    return total, xloss


if __name__ == "__main__":
    key = jax.random.PRNGKey(0)
    k1, k2, k3, k4 = jax.random.split(key, 4)

    N, C = 2, 10                                               # batch, num classes
    x = jax.random.normal(k1, (2, 4, 16, 16), jnp.float32)     # NCHW model input (unused by loss math)
    grad = jax.random.normal(k2, (2, 4, 16, 16), jnp.float32)  # d loss / d x
    outputs = jax.random.normal(k3, (N, C), jnp.float32)       # model(x) logits
    y = jax.random.randint(k4, (N,), 0, C, jnp.int32)

    alpha = 0.1
    total, xloss = gradient_regularization(outputs, grad, y, alpha=alpha, x=x)
    total = jax.block_until_ready(total)
    xloss = jax.block_until_ready(xloss)

    # Emulate `xl.append(xloss.detach().cpu().item())`
    xl = []
    xl.append(float(xloss))

    # Pure-JAX reference check
    logp_ref = jax.nn.log_softmax(outputs, axis=1)
    nll_ref = -jnp.sum(logp_ref[jnp.arange(N), y]) / N
    xloss_ref = jnp.mean(jnp.abs(grad))
    total_ref = nll_ref + alpha * xloss_ref

    assert jnp.allclose(total, total_ref, rtol=1e-5, atol=1e-5), (total, total_ref)
    assert jnp.allclose(xloss, xloss_ref, rtol=1e-5, atol=1e-5), (xloss, xloss_ref)

    print("KERNEL_OK")
</pallas_src>

<mosaic_0001>
module attributes {stable_mosaic.version = 11 : i64} {
  func.func @kernel(%arg0: i32, %arg1: memref<2x10xf32, #tpu.memory_space<vmem>>, %arg2: memref<2x1xi32, #tpu.memory_space<vmem>>, %arg3: memref<16x128xf32, #tpu.memory_space<vmem>>, %arg4: memref<1x1xf32, #tpu.memory_space<vmem>>, %arg5: memref<1x1xf32, #tpu.memory_space<vmem>>, %arg6: memref<8x128xf32, #tpu.memory_space<vmem>>, %arg7: memref<1x1xf32, #tpu.memory_space<vmem>>) attributes {dimension_semantics = [#tpu.dimension_semantics<arbitrary>], iteration_bounds = array<i64: 1>, scalar_prefetch = 0 : i64, scratch_operands = 2 : i64, tpu.core_type = #tpu.core_type<tc>, window_params = [{transform_indices = @transform_0, window_bounds = array<i64: 2, 10>}, {transform_indices = @transform_1, window_bounds = array<i64: 2, 1>}, {transform_indices = @transform_2, window_bounds = array<i64: 16, 128>}, {pipeline_mode = #tpu.pipeline_mode<synchronous>, transform_indices = @transform_3, window_bounds = array<i64: 1, 1>}, {pipeline_mode = #tpu.pipeline_mode<synchronous>, transform_indices = @transform_4, window_bounds = array<i64: 1, 1>}]} {
    %c0_i32 = arith.constant 0 : i32
    %0 = arith.cmpi eq, %arg0, %c0_i32 : i32
    %1 = arith.extui %0 : i1 to i32
    %c0_i32_0 = arith.constant 0 : i32
    %2 = arith.cmpi ne, %1, %c0_i32_0 : i32
    scf.if %2 {
      %cst = arith.constant 0.000000e+00 : f32
      %12 = vector.broadcast %cst : f32 to vector<8x128xf32>
      %c0 = arith.constant 0 : index
      %c0_6 = arith.constant 0 : index
      %13 = vector.load %arg6[%c0, %c0_6] : memref<8x128xf32, #tpu.memory_space<vmem>>, vector<8x128xf32>
      tpu.vector_store %arg6[%c0, %c0_6], %12 {strides = array<i32>} : memref<8x128xf32, #tpu.memory_space<vmem>>, vector<8x128xf32>,
      %cst_7 = arith.constant 0.000000e+00 : f32
      %14 = vector.broadcast %cst_7 : f32 to vector<1x1xf32>
      %c0_8 = arith.constant 0 : index
      %c0_9 = arith.constant 0 : index
      %15 = vector.load %arg7[%c0_8, %c0_9] : memref<1x1xf32, #tpu.memory_space<vmem>>, vector<1x1xf32>
      tpu.vector_store %arg7[%c0_8, %c0_9], %14 {strides = array<i32>} : memref<1x1xf32, #tpu.memory_space<vmem>>, vector<1x1xf32>,
    } else {
    }
    %c1_i32 = arith.constant 1 : i32
    %3 = arith.cmpi slt, %arg0, %c1_i32 : i32
    %4 = arith.extui %3 : i1 to i32
    %c0_i32_1 = arith.constant 0 : i32
    %5 = arith.cmpi ne, %4, %c0_i32_1 : i32
    scf.if %5 {
      %c0 = arith.constant 0 : index
      %c0_6 = arith.constant 0 : index
      %12 = vector.load %arg3[%c0, %c0_6] : memref<16x128xf32, #tpu.memory_space<vmem>>, vector<16x128xf32>
      %13 = math.absf %12 : vector<16x128xf32>
      %c0_7 = arith.constant 0 : index
      %c0_8 = arith.constant 0 : index
      %14 = vector.load %arg6[%c0_7, %c0_8] : memref<8x128xf32, #tpu.memory_space<vmem>>, vector<8x128xf32>
      %15 = vector.shape_cast %13 : vector<16x128xf32> to vector<2x8x128xf32>
      %cst = arith.constant dense<0.000000e+00> : vector<8x128xf32>
      %16 = vector.multi_reduction <add>, %15, %cst [0] : vector<2x8x128xf32> to vector<8x128xf32>
      %17 = arith.addf %14, %16 : vector<8x128xf32>
      %c0_9 = arith.constant 0 : index
      %c0_10 = arith.constant 0 : index
      %18 = vector.load %arg6[%c0_9, %c0_10] : memref<8x128xf32, #tpu.memory_space<vmem>>, vector<8x128xf32>
      tpu.vector_store %arg6[%c0_9, %c0_10], %17 {strides = array<i32>} : memref<8x128xf32, #tpu.memory_space<vmem>>, vector<8x128xf32>,
    } else {
    }
    %c1_i32_2 = arith.constant 1 : i32
    %6 = arith.cmpi slt, %arg0, %c1_i32_2 : i32
    %7 = arith.extui %6 : i1 to i32
    %c0_i32_3 = arith.constant 0 : i32
    %8 = arith.cmpi ne, %7, %c0_i32_3 : i32
    scf.if %8 {
      %c0 = arith.constant 0 : index
      %c0_6 = arith.constant 0 : index
      %12 = vector.load %arg1[%c0, %c0_6] : memref<2x10xf32, #tpu.memory_space<vmem>>, vector<2x10xf32>
      %cst = arith.constant dense<0xFF800000> : vector<2xf32>
      %13 = vector.multi_reduction <maximumf>, %12, %cst [1] : vector<2x10xf32> to vector<2xf32>
      %14 = vector.shape_cast %13 : vector<2xf32> to vector<2x1xf32>
      %15 = vector.broadcast %14 : vector<2x1xf32> to vector<2x10xf32>
      %16 = arith.subf %12, %15 : vector<2x10xf32>
      %17 = math.exp %16 : vector<2x10xf32>
      %cst_7 = arith.constant dense<0.000000e+00> : vector<2xf32>
      %18 = vector.multi_reduction <add>, %17, %cst_7 [1] : vector<2x10xf32> to vector<2xf32>
      %19 = vector.shape_cast %18 : vector<2xf32> to vector<2x1xf32>
      %20 = math.log %19 : vector<2x1xf32>
      %21 = arith.addf %20, %14 : vector<2x1xf32>
      %22 = tpu.iota {dimensions = array<i32: 1>} : vector<2x10xi32>
      %c0_8 = arith.constant 0 : index
      %c0_9 = arith.constant 0 : index
      %23 = vector.load %arg2[%c0_8, %c0_9] : memref<2x1xi32, #tpu.memory_space<vmem>>, vector<2x1xi32>
      %24 = vector.broadcast %23 : vector<2x1xi32> to vector<2x10xi32>
      %25 = arith.cmpi eq, %22, %24 : vector<2x10xi32>
      %cst_10 = arith.constant 0.000000e+00 : f32
      %26 = vector.broadcast %cst_10 : f32 to vector<2x10xf32>
      %27 = arith.select %25, %12, %26 : vector<2x10xi1>, vector<2x10xf32>
      %cst_11 = arith.constant dense<0.000000e+00> : vector<2xf32>
      %28 = vector.multi_reduction <add>, %27, %cst_11 [1] : vector<2x10xf32> to vector<2xf32>
      %29 = vector.shape_cast %28 : vector<2xf32> to vector<2x1xf32>
      %30 = arith.subf %21, %29 : vector<2x1xf32>
      %c0_12 = arith.constant 0 : index
      %c0_13 = arith.constant 0 : index
      %31 = vector.load %arg7[%c0_12, %c0_13] : memref<1x1xf32, #tpu.memory_space<vmem>>, vector<1x1xf32>
      %cst_14 = arith.constant dense<0.000000e+00> : vector<1xf32>
      %32 = vector.multi_reduction <add>, %30, %cst_14 [0] : vector<2x1xf32> to vector<1xf32>
      %33 = vector.shape_cast %32 : vector<1xf32> to vector<1x1xf32>
      %34 = arith.addf %31, %33 : vector<1x1xf32>
      %c0_15 = arith.constant 0 : index
      %c0_16 = arith.constant 0 : index
      %35 = vector.load %arg7[%c0_15, %c0_16] : memref<1x1xf32, #tpu.memory_space<vmem>>, vector<1x1xf32>
      tpu.vector_store %arg7[%c0_15, %c0_16], %34 {strides = array<i32>} : memref<1x1xf32, #tpu.memory_space<vmem>>, vector<1x1xf32>,
    } else {
    }
    %c0_i32_4 = arith.constant 0 : i32
    %9 = arith.cmpi eq, %arg0, %c0_i32_4 : i32
    %10 = arith.extui %9 : i1 to i32
    %c0_i32_5 = arith.constant 0 : i32
    %11 = arith.cmpi ne, %10, %c0_i32_5 : i32
    scf.if %11 {
      %c0 = arith.constant 0 : index
      %c0_6 = arith.constant 0 : index
      %12 = vector.load %arg6[%c0, %c0_6] : memref<8x128xf32, #tpu.memory_space<vmem>>, vector<8x128xf32>
      %cst = arith.constant dense<0.000000e+00> : vector<128xf32>
      %13 = vector.multi_reduction <add>, %12, %cst [0] : vector<8x128xf32> to vector<128xf32>
      %14 = vector.shape_cast %13 : vector<128xf32> to vector<1x128xf32>
      %cst_7 = arith.constant dense<0.000000e+00> : vector<1xf32>
      %15 = vector.multi_reduction <add>, %14, %cst_7 [1] : vector<1x128xf32> to vector<1xf32>
      %16 = vector.shape_cast %15 : vector<1xf32> to vector<1x1xf32>
      %cst_8 = arith.constant 4.8828125E-4 : f32
      %17 = vector.broadcast %cst_8 : f32 to vector<1x1xf32>
      %18 = arith.mulf %16, %17 : vector<1x1xf32>
      %c0_9 = arith.constant 0 : index
      %c0_10 = arith.constant 0 : index
      %19 = vector.load %arg7[%c0_9, %c0_10] : memref<1x1xf32, #tpu.memory_space<vmem>>, vector<1x1xf32>
      %cst_11 = arith.constant 5.000000e-01 : f32
      %20 = vector.broadcast %cst_11 : f32 to vector<1x1xf32>
      %21 = arith.mulf %19, %20 : vector<1x1xf32>
      %cst_12 = arith.constant 1.000000e-01 : f32
      %22 = vector.broadcast %cst_12 : f32 to vector<1x1xf32>
      %23 = arith.mulf %22, %18 : vector<1x1xf32>
      %24 = arith.addf %21, %23 : vector<1x1xf32>
      %c0_13 = arith.constant 0 : index
      %c0_14 = arith.constant 0 : index
      %25 = vector.load %arg5[%c0_13, %c0_14] : memref<1x1xf32, #tpu.memory_space<vmem>>, vector<1x1xf32>
      tpu.vector_store %arg5[%c0_13, %c0_14], %18 {strides = array<i32>} : memref<1x1xf32, #tpu.memory_space<vmem>>, vector<1x1xf32>,
      %c0_15 = arith.constant 0 : index
      %c0_16 = arith.constant 0 : index
      %26 = vector.load %arg4[%c0_15, %c0_16] : memref<1x1xf32, #tpu.memory_space<vmem>>, vector<1x1xf32>
      tpu.vector_store %arg4[%c0_15, %c0_16], %24 {strides = array<i32>} : memref<1x1xf32, #tpu.memory_space<vmem>>, vector<1x1xf32>,
    } else {
    }
    return
  }
  func.func @transform_0(%arg0: i32) -> (i32, i32) {
    %c0_i32 = arith.constant 0 : i32
    %0 = arith.minsi %arg0, %c0_i32 : i32
    %c0_i32_0 = arith.constant 0 : i32
    %c0_i32_1 = arith.constant 0 : i32
    return %0, %c0_i32_0 : i32, i32
  }
  func.func @transform_1(%arg0: i32) -> (i32, i32) {
    %c0_i32 = arith.constant 0 : i32
    %0 = arith.minsi %arg0, %c0_i32 : i32
    %c0_i32_0 = arith.constant 0 : i32
    %c0_i32_1 = arith.constant 0 : i32
    return %0, %c0_i32_0 : i32, i32
  }
  func.func @transform_2(%arg0: i32) -> (i32, i32) {
    %c0_i32 = arith.constant 0 : i32
    %0 = arith.minsi %arg0, %c0_i32 : i32
    %c0_i32_0 = arith.constant 0 : i32
    %c0_i32_1 = arith.constant 0 : i32
    return %0, %c0_i32_0 : i32, i32
  }
  func.func @transform_3(%arg0: i32) -> (i32, i32) {
    %c0_i32 = arith.constant 0 : i32
    %c0_i32_0 = arith.constant 0 : i32
    %c0_i32_1 = arith.constant 0 : i32
    return %c0_i32, %c0_i32_0 : i32, i32
  }
  func.func @transform_4(%arg0: i32) -> (i32, i32) {
    %c0_i32 = arith.constant 0 : i32
    %c0_i32_0 = arith.constant 0 : i32
    %c0_i32_1 = arith.constant 0 : i32
    return %c0_i32, %c0_i32_0 : i32, i32
  }
}

</mosaic_0001>

<bundles_post_ra>
// kernel: tpu_custom_call.1
= control target key start
LH: loop header
LB: loop body
LE: loop exit
PB: predicated region body
PF: predicated region fallthrough
CT: control target
= control target key end

     0   :  { %10 = vsyncpa [#allocation5], 0  ;;  %s270_s0 = inlined_call_operand.vmem [shape: f32[2,10], index: 0, kind: input, shape index: {}]   ;;  %s271_s1 = inlined_call_operand.vmem [shape: s32[2,1], index: 1, kind: input, shape index: {}]   ;;  %s272_s2 = inlined_call_operand.hbm [shape: f32[16,128], index: 2, kind: input, shape index: {}]   ;;  %s273_s3 = inlined_call_operand.hbm [shape: f32[1,1], index: 3, kind: output, shape index: {0}]   ;;  %s274_s4 = inlined_call_operand.hbm [shape: f32[1,1], index: 4, kind: output, shape index: {1}]  }
   0x1   :  { %11 = vsyncpa [#allocation6], 0 }
   0x2   :  { %12 = vsyncpa [#allocation9], 0  ;;  %s216_s15 = smov [#allocation4]  }
   0x3   :  { %s22_s16 = sshll.u32 %s216_s15, 4  ;;  %s23_s16 = int_to_ptr.vmem [resolvable:$true] %s22_s16 }
   0x4   :  { %s158_s17 = scalar_lea.vmem %s23_s16, 256  ;;  %p163_p1 = scmp.lt.s32.totalorder %s23_s16, %s23_s16 }
   0x5   :  { %p159_p0 = scmp.ne.s32.totalorder %s23_s16, %s158_s17  ;;  %p164_p2 = scmp.lt.s32.totalorder %s158_s17, %s158_s17 }
   0x7   :  { %p165_p3 = por %p164_p2, %p163_p1 }
   0x9   :  { %p166_p4 = pnand %p165_p3, %p159_p0 }
   0xb   :  { %169 = shalt.err (!%p166_p4)
}
   0xc   :  { %s217_s18 = smov 128   ;;  %s218_s19 = smov 8  }
   0xd   :  { %28 = dma.hbm_to_vmem [thread:$0]  %s272_s2, 256, %s23_s16, [#allocation5], %s217_s18, %s217_s18, %s218_s19  }
   0xe   :  { %210 = dma.done.wait [#allocation5], 256  }
   0xf   :  { %211 = vsyncadd [#allocation5], 4294967040  ;;  %v219_v0 = vmov 0   ;;  %vm52_vm0 = vcmask 74752   ;;  %v51_v1 = vld [vmem:[%s270_s0] sm:$0x3]  ;;  %v65_v13 = vlaneseq }
  0x10   :  { %145 = vset.pattern.permute.xlu0 %v219_v0  ;;  %v53_v2 = vsel %vm52_vm0, %v51_v1, -inf  ;;  %v67_v3 = vld [vmem:[%s271_s1] sm:$0x3]  ;;  %v44_v5 = vld [vmem:[#allocation4 + $0x8] sm:$0xff]  ;;  %vm37_vm2 = vcmask 0   ;;  %v220_v25 = vmov 0.0  }
  0x11   :  { %54 = vmax.xlane.f32.xlu0 %v53_v2  ;;  %v43_v4 = vld [vmem:[#allocation4] sm:$0xff]  ;;  %v46_v7 = vand.u32 2147483647, %v44_v5  ;;  %v66_v15 = vand.u32 127, %v65_v13  ;;  %38 = vst.msk [vmem:[#allocation3] sm:$0x1] %vm37_vm2, %v220_v25 }
  0x12   :  { %v45_v6 = vand.u32 2147483647, %v43_v4  ;;  %s221_s0 = smov [#allocation8]  }
  0x13   :  { %s125_s1 = sshll.u32 %s221_s0, 4  ;;  %s126_s1 = int_to_ptr.vmem [resolvable:$true] %s125_s1 }
  0x14   :  { %v48_v9 = vadd.f32 %v46_v7, %v45_v6  ;;  %s170_s2 = scalar_lea.vmem %s126_s1, 16  ;;  %s174_s26 = scalar_lea.vmem %s126_s1, 32 }
  0x15   :  { %p171_p5 = scmp.ne.s32.totalorder %s126_s1, %s170_s2  ;;  %p175_p6 = scmp.lt.s32.totalorder %s126_s1, %s126_s1 }
  0x16   :  { %v93_v12 = vrot.slane %v48_v9, 4  ;;  %p176_p7 = scmp.lt.s32.totalorder %s174_s26, %s170_s2 }
  0x18   :  { %v94_v14 = vadd.f32 %v93_v12, %v48_v9  ;;  %p177_p8 = por %p176_p7, %p175_p6 }
  0x1a   :  { %v95_v17 = vrot.slane %v94_v14, 2  ;;  %p178_p9 = pnand %p177_p8, %p171_p5 }
  0x1c   :  { %v96_v18 = vadd.f32 %v95_v17, %v94_v14 }
  0x1e   :  { %v97_v22 = vrot.slane %v96_v18, 1 }
  0x20   :  { %v98_v24 = vadd.f32 %v97_v22, %v96_v18 }
  0x27   :  { %69 = vperm.xlu0 %145, %v67_v3  }
  0x9a   :  { %v55_v8 = vpop.xlane.xlu0 %54 }
  0x9b   :  { %v56_v10 = vsub.f32 %v51_v1, %v55_v8 }
  0x9d   :  { %v57_v11 = vmul.f32 1.442695, %v56_v10 }
  0x9f   :  { %146 = vpow2.f32 %v57_v11 }
  0xa2   :  { %v70_v16 = vpop.permute.xlu0 %69 }
  0xa3   :  { %vm71_vm1 = vcmp.eq.s32.totalorder %v66_v15, %v70_v16 }
  0xa4   :  { %v72_v20 = vsel %vm71_vm1, %v51_v1, 0.0 }
  0xa5   :  { %v73_v23 = vsel %vm52_vm0, %v72_v20, 0.0 }
  0xac   :  { %v147_v19 = vpop.eup %146 }
  0xad   :  { %v59_v21 = vsel %vm52_vm0, %v147_v19, 0.0 }
  0xae   :  { %60 = vadd.xlane.f32.xlu1 %v59_v21 }
  0xb2   :  { %74 = vadd.xlane.f32.xlu1 %v73_v23 }
  0xb6   :  { %99 = vadd.xlane.f32.xlu1 %v98_v24 }
 0x137   :  { %v61_v26 = vpop.xlane.xlu1 %60 }
 0x138   :  { %148 = vlog2.f32 %v61_v26 }
 0x13b   :  { %v75_v27 = vpop.xlane.xlu1 %74 }
 0x13f   :  { %v100_v28 = vpop.xlane.xlu1 %99 }
 0x140   :  { %v101_v29 = vmul.f32 0.00048828125, %v100_v28 }
 0x142   :  { %107 = vst.msk [vmem:[#allocation8] sm:$0x1] %vm37_vm2, %v101_v29 }
 0x143   :  { %181 = shalt.err (!%p178_p9)
}
 0x144   :  { %128 = dma.vmem_to_hbm [thread:$0]  %s126_s1, 16, %s274_s4, [#allocation9]   ;;  %vm78_vm3 = vcmask 1041408   ;;  %v77_v40 = vld [vmem:[#allocation3] sm:$0x1] }
 0x145   :  { %v149_v30 = vpop.eup %148  ;;  %v104_v43 = vmul.f32 0.1, %v101_v29  ;;  %s222_s29 = smov [#allocation7]  }
 0x146   :  { %v63_v31 = vmul.f32 0.6931472, %v149_v30  ;;  %s115_s4 = sshll.u32 %s222_s29, 4  ;;  %s116_s4 = int_to_ptr.vmem [resolvable:$true] %s115_s4 }
 0x147   :  { %s190_s30 = scalar_lea.vmem %s116_s4, 16  ;;  %s194_s5 = scalar_lea.vmem %s116_s4, 32 }
 0x148   :  { %v64_v32 = vadd.f32 %v63_v31, %v55_v8  ;;  %p191_p10 = scmp.ne.s32.totalorder %s116_s4, %s190_s30  ;;  %p195_p11 = scmp.lt.s32.totalorder %s116_s4, %s116_s4 }
 0x149   :  { %p196_p12 = scmp.lt.s32.totalorder %s194_s5, %s190_s30 }
 0x14a   :  { %v76_v33 = vsub.f32 %v64_v32, %v75_v27 }
 0x14b   :  { %p197_p13 = por %p196_p12, %p195_p11 }
 0x14c   :  { %v79_v34 = vsel %vm78_vm3, %v76_v33, 0.0 }
 0x14d   :  { %v80_v35 = vrot.slane %v79_v34, 4  ;;  %p198_p0 = pnand %p197_p13, %p191_p10 }
 0x14f   :  { %v81_v36 = vadd.f32 %v80_v35, %v79_v34 }
 0x151   :  { %v82_v37 = vrot.slane %v81_v36, 2 }
 0x153   :  { %v83_v38 = vadd.f32 %v82_v37, %v81_v36 }
 0x155   :  { %v84_v39 = vrot.slane %v83_v38, 1 }
 0x157   :  { %v85_v41 = vadd.f32 %v84_v39, %v83_v38 }
 0x159   :  { %v86_v42 = vadd.f32 %v85_v41, %v77_v40 }
 0x15b   :  { %88 = vst.msk [vmem:[#allocation3] sm:$0x1] %vm37_vm2, %v86_v42 }
 0x162   :  { %v102_v44 = vld [vmem:[#allocation3] sm:$0x1] }
 0x163   :  { %v103_v45 = vmul.f32 0.5, %v102_v44 }
 0x165   :  { %v105_v46 = vadd.f32 %v104_v43, %v103_v45 }
 0x167   :  { %108 = vst.msk [vmem:[#allocation7] sm:$0x1] %vm37_vm2, %v105_v46 }
 0x168   :  { %201 = shalt.err (!%p198_p0)
}
 0x169   :  { %118 = dma.vmem_to_hbm [thread:$0]  %s116_s4, 16, %s273_s3, [#allocation6]  }
 0x16a   :  { %212 = dma.done.wait [#allocation6], 16  }
 0x16b   :  { %213 = vsyncadd [#allocation6], 4294967280 }
 0x16c   :  { %214 = dma.done.wait [#allocation9], 16  }
 0x16d   :  { %215 = vsyncadd [#allocation9], 4294967280 }
 0x16e   :  { %135 = vsyncpa [#allocation5], 1 }
 0x16f   :  { %136 = vsyncpa [#allocation6], 1 }
 0x170   :  { %137 = vsyncpa [#allocation9], 1 }

</bundles_post_ra>
